<compile_context>
chip_gen: v5e
topology: v5e:2x2
jax: 0.10.0
libtpu: 0.0.40
codegen_flags: <defaults>
</compile_context>

<pallas_src>
import jax
import jax.numpy as jnp
from jax.experimental import pallas as pl
from jax.experimental.pallas import tpu as pltpu

LN_EPS = 1e-5
_INV_SQRT2 = 0.7071067811865476


def projection_head_kernel(x_ref, w1_ref, w2_ref, params_ref, o_ref):
    # x tile [tm, E] in the matmul dtype (bf16 by default).
    x = x_ref[...]
    w1 = w1_ref[...]
    w2 = w2_ref[...]

    params = params_ref[...].astype(jnp.float32)   # (4, P): b1, b2, gamma, beta
    b1 = params[0:1, :]
    b2 = params[1:2, :]
    gamma = params[2:3, :]
    beta = params[3:4, :]

    # projection = Linear(E -> P); MXU matmul with f32 accumulation.
    projected = jnp.dot(x, w1, preferred_element_type=jnp.float32) + b1

    # Exact erf-based GELU (nn.GELU(approximate='none')), computed in f32.
    h = 0.5 * projected * (1.0 + jax.lax.erf(projected * _INV_SQRT2))

    # fc = Linear(P -> P); feed the MXU in the matmul dtype, accumulate in f32.
    h = jnp.dot(h.astype(w2.dtype), w2, preferred_element_type=jnp.float32) + b2

    # TODO(synk): training-mode dropout (RNG mask) not implemented; inference = identity.
    # Residual add.
    h = h + projected

    # LayerNorm over the last dim; gamma folded into the rsqrt scale.
    mean = jnp.mean(h, axis=-1, keepdims=True)
    centered = h - mean
    var = jnp.mean(centered * centered, axis=-1, keepdims=True)
    scale = gamma * jax.lax.rsqrt(var + LN_EPS)
    o_ref[...] = (centered * scale + beta).astype(o_ref.dtype)


def _round_up(x, m):
    return -(-x // m) * m


def projection_head(x, w1, b1, w2, b2, gamma, beta, *, tm=256,
                    use_bf16_matmul=True):
    """x: [B, E]. w1: [E, P], w2: [P, P] (pre-transposed), b1/b2/gamma/beta: [P]."""
    B, E = x.shape
    P = w1.shape[1]
    out_dtype = x.dtype

    mm_dtype = jnp.bfloat16 if use_bf16_matmul else jnp.float32
    x_mm = x.astype(mm_dtype)
    w1_mm = w1.astype(mm_dtype)
    w2_mm = w2.astype(mm_dtype)

    # Pack the small per-feature parameters into one (4, P) operand (one DMA).
    params = jnp.stack([b1, b2, gamma, beta], axis=0).astype(jnp.float32)

    # Batch tile: multiple of 8 sublanes, capped by the (8-rounded) batch so tiny
    # batches don't become a 256-row tile of padding.  Large B -> 256-row tiles.
    tm_eff = max(8, min(_round_up(tm, 8), _round_up(B, 8)))
    Bp = _round_up(B, tm_eff)
    if Bp != B:
        x_mm = jnp.pad(x_mm, ((0, Bp - B), (0, 0)))
    grid = (Bp // tm_eff,)

    # VMEM budget: double-buffered x/out tiles + single-buffered weights/params
    # + headroom for f32 intermediates.  Explicit so v7x (64 MiB VMEM) doesn't spill.
    mm_bytes = jnp.dtype(mm_dtype).itemsize
    out_bytes = jnp.dtype(out_dtype).itemsize
    vmem_bytes = (2 * tm_eff * E * mm_bytes          # x double-buffer
                  + 2 * tm_eff * P * out_bytes       # out double-buffer
                  + (E * P + P * P) * mm_bytes       # resident weights (single-buffered)
                  + 4 * P * 4                        # packed params
                  + 4 * tm_eff * P * 4)              # f32 intermediate headroom
    vmem_limit = int(min(100 * 1024 * 1024, vmem_bytes + (4 << 20)))

    def resident(shape):
        # Grid-invariant operand: constant index_map, single-buffered.
        return pl.BlockSpec(shape, lambda i: (0,) * len(shape),
                            pipeline_mode=pl.Buffered(1))

    out = pl.pallas_call(
        projection_head_kernel,
        out_shape=jax.ShapeDtypeStruct((Bp, P), out_dtype),
        grid_spec=pltpu.PrefetchScalarGridSpec(
            num_scalar_prefetch=0,
            grid=grid,
            in_specs=[
                pl.BlockSpec((tm_eff, E), lambda i: (i, 0)),   # x tile
                resident((E, P)),                              # W1 (full, resident)
                resident((P, P)),                              # W2 (full, resident)
                resident((4, P)),                              # b1/b2/gamma/beta
            ],
            out_specs=pl.BlockSpec((tm_eff, P), lambda i: (i, 0)),
        ),
        compiler_params=pltpu.CompilerParams(
            dimension_semantics=("parallel",),
            vmem_limit_bytes=vmem_limit),
    )(x_mm, w1_mm, w2_mm, params)

    if Bp != B:
        out = out[:B]
    return out


def reference_f32(x, w1, b1, w2, b2, gamma, beta):
    projected = x @ w1 + b1
    h = jax.nn.gelu(projected, approximate=False)
    h = h @ w2 + b2
    h = h + projected
    mean = jnp.mean(h, axis=-1, keepdims=True)
    var = jnp.mean((h - mean) ** 2, axis=-1, keepdims=True)
    return (h - mean) * jax.lax.rsqrt(var + LN_EPS) * gamma + beta


def reference_mixed(x, w1, b1, w2, b2, gamma, beta):
    # Mirrors the kernel's precision policy: bf16 MXU inputs, f32 accumulation.
    bf = jnp.bfloat16
    projected = jnp.dot(x.astype(bf), w1.astype(bf),
                        preferred_element_type=jnp.float32) + b1
    h = jax.nn.gelu(projected, approximate=False)
    h = jnp.dot(h.astype(bf), w2.astype(bf),
                preferred_element_type=jnp.float32) + b2
    h = h + projected
    mean = jnp.mean(h, axis=-1, keepdims=True)
    var = jnp.mean((h - mean) ** 2, axis=-1, keepdims=True)
    return (h - mean) * jax.lax.rsqrt(var + LN_EPS) * gamma + beta


if __name__ == "__main__":
    embedding_dim = 32
    projection_dim = 128
    batch = 8

    key = jax.random.PRNGKey(0)
    kx, k1, k2, k3, k4, kx2 = jax.random.split(key, 6)

    x = jax.random.normal(kx, (batch, embedding_dim), dtype=jnp.float32)

    # Deterministic synthetic parameters (shapes from nn.Linear / nn.LayerNorm).
    # Weights stored pre-transposed: [in_dim, out_dim].
    w1 = jax.random.normal(k1, (embedding_dim, projection_dim), dtype=jnp.float32) * 0.05
    b1 = jax.random.normal(k2, (projection_dim,), dtype=jnp.float32) * 0.01
    w2 = jax.random.normal(k3, (projection_dim, projection_dim), dtype=jnp.float32) * 0.05
    b2 = jax.random.normal(k4, (projection_dim,), dtype=jnp.float32) * 0.01
    gamma = jnp.ones((projection_dim,), dtype=jnp.float32)
    beta = jnp.zeros((projection_dim,), dtype=jnp.float32)

    out = projection_head(x, w1, b1, w2, b2, gamma, beta)
    out = jax.block_until_ready(out)
    assert out.shape == (batch, projection_dim)

    ref_mix = reference_mixed(x, w1, b1, w2, b2, gamma, beta)
    ref_f32 = reference_f32(x, w1, b1, w2, b2, gamma, beta)
    assert jnp.allclose(out, ref_mix, atol=1e-3, rtol=1e-3), "mismatch vs mixed-precision reference"
    assert jnp.allclose(out, ref_f32, atol=3e-2, rtol=3e-2), "mismatch vs f32 reference"

    # Exercise the pad-and-slice path (batch not a multiple of 8 / of the tile).
    batch2 = 37
    x2 = jax.random.normal(kx2, (batch2, embedding_dim), dtype=jnp.float32)
    out2 = jax.block_until_ready(projection_head(x2, w1, b1, w2, b2, gamma, beta))
    ref2 = reference_mixed(x2, w1, b1, w2, b2, gamma, beta)
    assert out2.shape == (batch2, projection_dim)
    assert jnp.allclose(out2, ref2, atol=1e-3, rtol=1e-3), "mismatch on padded batch"

    print("KERNEL_OK")
</pallas_src>

<mosaic_0001>
module attributes {stable_mosaic.version = 11 : i64} {
  func.func @projection_head_kernel(%arg0: i32, %arg1: memref<8x32xbf16, #tpu.memory_space<vmem>>, %arg2: memref<32x128xbf16, #tpu.memory_space<vmem>>, %arg3: memref<128x128xbf16, #tpu.memory_space<vmem>>, %arg4: memref<4x128xf32, #tpu.memory_space<vmem>>, %arg5: memref<8x128xf32, #tpu.memory_space<vmem>>) attributes {dimension_semantics = [#tpu.dimension_semantics<parallel>], iteration_bounds = array<i64: 1>, scalar_prefetch = 0 : i64, scratch_operands = 0 : i64, tpu.core_type = #tpu.core_type<tc>, window_params = [{transform_indices = @transform_0, window_bounds = array<i64: 8, 32>}, {pipeline_mode = #tpu.pipeline_mode<synchronous>, transform_indices = @transform_1, window_bounds = array<i64: 32, 128>}, {pipeline_mode = #tpu.pipeline_mode<synchronous>, transform_indices = @transform_2, window_bounds = array<i64: 128, 128>}, {pipeline_mode = #tpu.pipeline_mode<synchronous>, transform_indices = @transform_3, window_bounds = array<i64: 4, 128>}, {transform_indices = @transform_4, window_bounds = array<i64: 8, 128>}]} {
    %c0 = arith.constant 0 : index
    %c0_0 = arith.constant 0 : index
    %0 = vector.load %arg1[%c0, %c0_0] : memref<8x32xbf16, #tpu.memory_space<vmem>>, vector<8x32xbf16>
    %c0_1 = arith.constant 0 : index
    %c0_2 = arith.constant 0 : index
    %1 = vector.load %arg2[%c0_1, %c0_2] : memref<32x128xbf16, #tpu.memory_space<vmem>>, vector<32x128xbf16>
    %c0_3 = arith.constant 0 : index
    %c0_4 = arith.constant 0 : index
    %2 = vector.load %arg3[%c0_3, %c0_4] : memref<128x128xbf16, #tpu.memory_space<vmem>>, vector<128x128xbf16>
    %c0_5 = arith.constant 0 : index
    %c0_6 = arith.constant 0 : index
    %3 = vector.load %arg4[%c0_5, %c0_6] : memref<4x128xf32, #tpu.memory_space<vmem>>, vector<4x128xf32>
    %4 = vector.extract_strided_slice %3 {offsets = [0, 0], sizes = [1, 128], strides = [1, 1]} : vector<4x128xf32> to vector<1x128xf32>
    %5 = vector.extract_strided_slice %3 {offsets = [1, 0], sizes = [1, 128], strides = [1, 1]} : vector<4x128xf32> to vector<1x128xf32>
    %6 = vector.extract_strided_slice %3 {offsets = [2, 0], sizes = [1, 128], strides = [1, 1]} : vector<4x128xf32> to vector<1x128xf32>
    %7 = vector.extract_strided_slice %3 {offsets = [3, 0], sizes = [1, 128], strides = [1, 1]} : vector<4x128xf32> to vector<1x128xf32>
    %cst = arith.constant dense<0.000000e+00> : vector<8x128xf32>
    %8 = tpu.matmul %0, %1, %cst {dimension_numbers = #tpu.dot_dimension_numbers<[1], [0], [0], [1], [0, 0, 1, 1], [], []>} : vector<8x32xbf16>, vector<32x128xbf16>, vector<8x128xf32> -> vector<8x128xf32>
    %9 = vector.broadcast %4 : vector<1x128xf32> to vector<8x128xf32>
    %10 = arith.addf %8, %9 : vector<8x128xf32>
    %cst_7 = arith.constant 5.000000e-01 : f32
    %11 = vector.broadcast %cst_7 : f32 to vector<8x128xf32>
    %12 = arith.mulf %11, %10 : vector<8x128xf32>
    %cst_8 = arith.constant 0.707106769 : f32
    %13 = vector.broadcast %cst_8 : f32 to vector<8x128xf32>
    %14 = arith.mulf %10, %13 : vector<8x128xf32>
    %15 = math.erf %14 : vector<8x128xf32>
    %cst_9 = arith.constant 1.000000e+00 : f32
    %16 = vector.broadcast %cst_9 : f32 to vector<8x128xf32>
    %17 = arith.addf %16, %15 : vector<8x128xf32>
    %18 = arith.mulf %12, %17 : vector<8x128xf32>
    %19 = arith.truncf %18 : vector<8x128xf32> to vector<8x128xbf16>
    %cst_10 = arith.constant dense<0.000000e+00> : vector<8x128xf32>
    %20 = tpu.matmul %19, %2, %cst_10 {dimension_numbers = #tpu.dot_dimension_numbers<[1], [0], [0], [1], [0, 0, 1, 1], [], []>} : vector<8x128xbf16>, vector<128x128xbf16>, vector<8x128xf32> -> vector<8x128xf32>
    %21 = vector.broadcast %5 : vector<1x128xf32> to vector<8x128xf32>
    %22 = arith.addf %20, %21 : vector<8x128xf32>
    %23 = arith.addf %22, %10 : vector<8x128xf32>
    %cst_11 = arith.constant dense<0.000000e+00> : vector<8xf32>
    %24 = vector.multi_reduction <add>, %23, %cst_11 [1] : vector<8x128xf32> to vector<8xf32>
    %25 = vector.shape_cast %24 : vector<8xf32> to vector<8x1xf32>
    %cst_12 = arith.constant 1.280000e+02 : f32
    %26 = vector.broadcast %cst_12 : f32 to vector<8x1xf32>
    %27 = arith.divf %25, %26 : vector<8x1xf32>
    %28 = vector.broadcast %27 : vector<8x1xf32> to vector<8x128xf32>
    %29 = arith.subf %23, %28 : vector<8x128xf32>
    %30 = arith.mulf %29, %29 : vector<8x128xf32>
    %cst_13 = arith.constant dense<0.000000e+00> : vector<8xf32>
    %31 = vector.multi_reduction <add>, %30, %cst_13 [1] : vector<8x128xf32> to vector<8xf32>
    %32 = vector.shape_cast %31 : vector<8xf32> to vector<8x1xf32>
    %cst_14 = arith.constant 1.280000e+02 : f32
    %33 = vector.broadcast %cst_14 : f32 to vector<8x1xf32>
    %34 = arith.divf %32, %33 : vector<8x1xf32>
    %cst_15 = arith.constant 9.99999974E-6 : f32
    %35 = vector.broadcast %cst_15 : f32 to vector<8x1xf32>
    %36 = arith.addf %34, %35 : vector<8x1xf32>
    %37 = math.rsqrt %36 : vector<8x1xf32>
    %38 = vector.broadcast %6 : vector<1x128xf32> to vector<8x128xf32>
    %39 = vector.broadcast %37 : vector<8x1xf32> to vector<8x128xf32>
    %40 = arith.mulf %38, %39 : vector<8x128xf32>
    %41 = arith.mulf %29, %40 : vector<8x128xf32>
    %42 = vector.broadcast %7 : vector<1x128xf32> to vector<8x128xf32>
    %43 = arith.addf %41, %42 : vector<8x128xf32>
    %c0_16 = arith.constant 0 : index
    %c0_17 = arith.constant 0 : index
    %44 = vector.load %arg5[%c0_16, %c0_17] : memref<8x128xf32, #tpu.memory_space<vmem>>, vector<8x128xf32>
    tpu.vector_store %arg5[%c0_16, %c0_17], %43 {strides = array<i32>} : memref<8x128xf32, #tpu.memory_space<vmem>>, vector<8x128xf32>,
    return
  }
  func.func @transform_0(%arg0: i32) -> (i32, i32) {
    %c0_i32 = arith.constant 0 : i32
    %c0_i32_0 = arith.constant 0 : i32
    return %arg0, %c0_i32 : i32, i32
  }
  func.func @transform_1(%arg0: i32) -> (i32, i32) {
    %c0_i32 = arith.constant 0 : i32
    %c0_i32_0 = arith.constant 0 : i32
    %c0_i32_1 = arith.constant 0 : i32
    return %c0_i32, %c0_i32_0 : i32, i32
  }
  func.func @transform_2(%arg0: i32) -> (i32, i32) {
    %c0_i32 = arith.constant 0 : i32
    %c0_i32_0 = arith.constant 0 : i32
    %c0_i32_1 = arith.constant 0 : i32
    return %c0_i32, %c0_i32_0 : i32, i32
  }
  func.func @transform_3(%arg0: i32) -> (i32, i32) {
    %c0_i32 = arith.constant 0 : i32
    %c0_i32_0 = arith.constant 0 : i32
    %c0_i32_1 = arith.constant 0 : i32
    return %c0_i32, %c0_i32_0 : i32, i32
  }
  func.func @transform_4(%arg0: i32) -> (i32, i32) {
    %c0_i32 = arith.constant 0 : i32
    %c0_i32_0 = arith.constant 0 : i32
    return %arg0, %c0_i32 : i32, i32
  }
}

</mosaic_0001>

<bundles_post_ra>
// kernel: tpu_custom_call.1
= control target key start
LH: loop header
LB: loop body
LE: loop exit
PB: predicated region body
PF: predicated region fallthrough
CT: control target
= control target key end

     0   :  { %9 = vsyncpa [#allocation3], 0  ;;  %s537_s0 = inlined_call_operand.hbm [shape: bf16[8,32], index: 0, kind: input, shape index: {}]   ;;  %s538_s1 = inlined_call_operand.hbm [shape: bf16[32,128], index: 1, kind: input, shape index: {}]   ;;  %s539_s2 = inlined_call_operand.hbm [shape: bf16[128,128], index: 2, kind: input, shape index: {}]   ;;  %s540_s3 = inlined_call_operand.hbm [shape: f32[4,128], index: 3, kind: input, shape index: {}]   ;;  %s541_s4 = inlined_call_operand.hbm [shape: f32[8,128], index: 4, kind: output, shape index: {}]  }
   0x1   :  { %10 = vsyncpa [#allocation6], 0 }
   0x2   :  { %11 = vsyncpa [#allocation9], 0  ;;  %s28_s17 = sshll.u32 %s538_s1, 4  ;;  %s29_s17 = int_to_ptr.hbm [resolvable:$true] %s28_s17 }
   0x3   :  { %12 = vsyncpa [#allocation4], 0  ;;  %s483_s18 = smov [#allocation5]   ;;  %s18_s22 = sshll.u32 %s537_s0, 4  ;;  %s19_s22 = int_to_ptr.hbm [resolvable:$true] %s18_s22 }
   0x4   :  { %s30_s19 = sshll.u32 %s483_s18, 4  ;;  %s484_s23 = smov 64   ;;  %s31_s19 = int_to_ptr.vmem [resolvable:$true] %s30_s19 }
   0x5   :  { %s485_s24 = smov 4   ;;  %s486_s25 = smov [#allocation2]  }
   0x6   :  { %36 = dma.hbm_to_vmem [thread:$0]  %s29_s17, 256, %s31_s19, [#allocation6], %s484_s23, %s484_s23, %s485_s24  }
   0x7   :  { %s20_s26 = sshll.u32 %s486_s25, 4  ;;  %s41_s29 = sshll.u32 %s539_s2, 4  ;;  %s21_s26 = int_to_ptr.vmem [resolvable:$true] %s20_s26  ;;  %s42_s29 = int_to_ptr.hbm [resolvable:$true] %s41_s29 }
   0x8   :  { %23 = dma.hbm_to_vmem [thread:$0]  %s19_s22, 64, %s21_s26, [#allocation3]  }
   0x9   :  { %s55_s5 = sshll.u32 %s540_s3, 4  ;;  %s487_s6 = smov [#allocation7]   ;;  %s56_s5 = int_to_ptr.hbm [resolvable:$true] %s55_s5 }
   0xa   :  { %s43_s7 = sshll.u32 %s487_s6, 4  ;;  %s488_s0 = smov [#allocation8]   ;;  %s44_s7 = int_to_ptr.vmem [resolvable:$true] %s43_s7 }
   0xb   :  { %49 = dma.hbm_to_vmem [thread:$0]  %s42_s29, 1024, %s44_s7, [#allocation6], %s484_s23, %s484_s23, %s485_s24  }
   0xc   :  { %s57_s8 = sshll.u32 %s488_s0, 4  ;;  %s58_s8 = int_to_ptr.vmem [resolvable:$true] %s57_s8 }
   0xd   :  { %60 = dma.hbm_to_vmem [thread:$0]  %s56_s5, 64, %s58_s8, [#allocation9]  }
   0xe   :  { %475 = dma.done.wait [#allocation3], 64  }
   0xf   :  { %476 = vsyncadd [#allocation3], 4294967232 }
  0x10   :  { %477 = dma.done.wait [#allocation6], 1280  }
  0x11   :  { %478 = vsyncadd [#allocation6], 4294966016 }
  0x12   :  { %479 = dma.done.wait [#allocation9], 64  }
  0x13   :  { %480 = vsyncadd [#allocation9], 4294967232  ;;  %v332_v0 = vld [vmem:[#allocation5 + $0x8] sm:$0xff]  ;;  %v331_v1 = vld [vmem:[#allocation5] sm:$0xff]  ;;  %vm113_vm0 = vcmask 261120   ;;  %v489_v61 = vmov 128.0  }
  0x14   :  { %123 = vmatpush.bf16.msra.mxu0 %v332_v0  ;;  %v78_v2 = vld [vmem:[#allocation2] sm:$0xf]  ;;  %v340_v3 = vld [vmem:[#allocation7 + $0x38] sm:$0xff]  ;;  %v339_v4 = vld [vmem:[#allocation7 + $0x30] sm:$0xff]  ;;  %s490_s2 = smov [#allocation10]   ;;  %s277_s11 = sshll.u32 %s541_s4, 4  ;;  %s278_s11 = int_to_ptr.hbm [resolvable:$true] %s277_s11 }
  0x15   :  { %224 = vmatpush.bf16.msra.mxu1 %v340_v3  ;;  %v338_v5 = vld [vmem:[#allocation7 + $0x28] sm:$0xff]  ;;  %v337_v6 = vld [vmem:[#allocation7 + $0x20] sm:$0xff]  ;;  %v336_v7 = vld [vmem:[#allocation7 + $0x18] sm:$0xff]  ;;  %s275_s3 = sshll.u32 %s490_s2, 4  ;;  %s276_s3 = int_to_ptr.vmem [resolvable:$true] %s275_s3 }
  0x16   :  { %v528_v8 = vld [vmem:[#allocation8] sm:$0xf]  ;;  %v335_v9 = vld [vmem:[#allocation7 + $0x10] sm:$0xff]  ;;  %v334_v11 = vld [vmem:[#allocation7 + $0x8] sm:$0xff] }
  0x17   :  { %v100_v10 = vperm.slane %v528_v8, 0  ;;  %v333_v14 = vld [vmem:[#allocation7] sm:$0xff]  ;;  %v175_v56 = vperm.slane %v528_v8, 1 }
  0x18   :  { %124 = vmatpush.bf16.msra.mxu0 %v331_v1 }
  0x19   :  { %225 = vmatpush.bf16.msra.mxu1 %v339_v4 }
  0x1b   :  { %297 = vmatmul.msk.bf16.vlgmr.msra.gmra.mxu0 %vm113_vm0, %v78_v2 }
  0x1d   :  { %226 = vmatpush.bf16.msra.mxu1 %v338_v5 }
  0x21   :  { %227 = vmatpush.bf16.msra.mxu1 %v337_v6 }
  0x25   :  { %228 = vmatpush.bf16.msra.mxu1 %v336_v7 }
  0x29   :  { %229 = vmatpush.bf16.msra.mxu1 %v335_v9 }
  0x2d   :  { %230 = vmatpush.bf16.msra.mxu1 %v334_v11 }
  0x31   :  { %231 = vmatpush.bf16.msra.mxu1 %v333_v14 }
  0x98   :  { %v126_v12 = vpop.f32.mrf.mxu0 }
  0x99   :  { %v127_v13 = vadd.f32 %v126_v12, %v100_v10 }
  0x9b   :  { %v131_v15 = vmul.f32 0.70710677, %v127_v13  ;;  %v130_v52 = vmul.f32 0.5, %v127_v13 }
  0x9d   :  { %v132_v16 = vmul.f32 %v131_v15, %v131_v15 }
  0x9f   :  { %v133_v17 = vmin.f32 %v132_v16, 16.0 }
  0xa0   :  { %v128_v18 = vpop.f32.mrf.mxu0 }
  0xa1   :  { %v134_v19 = vmul.f32 2.1237322e-06, %v133_v17  ;;  %v145_v20 = vmul.f32 3.8918573e-05, %v133_v17 }
  0xa3   :  { %v135_v21 = vadd.f32 0.00028619796, %v134_v19  ;;  %v146_v22 = vadd.f32 0.001143296, %v145_v20 }
  0xa5   :  { %v136_v23 = vmul.f32 %v135_v21, %v133_v17  ;;  %v147_v24 = vmul.f32 %v146_v22, %v133_v17  ;;  %v267_v21 = vperm.slane %v528_v8, 3 }
  0xa7   :  { %v148_v25 = vadd.f32 0.014752088, %v147_v24  ;;  %v137_v26 = vadd.f32 0.0036580483, %v136_v23 }
  0xa9   :  { %v149_v27 = vmul.f32 %v148_v25, %v133_v17  ;;  %v138_v29 = vmul.f32 %v137_v26, %v133_v17 }
  0xab   :  { %v150_v28 = vadd.f32 0.112945676, %v149_v27  ;;  %v139_v32 = vadd.f32 0.05243302, %v138_v29 }
  0xad   :  { %v151_v30 = vmul.f32 %v150_v28, %v133_v17  ;;  %v140_v35 = vmul.f32 %v139_v32, %v133_v17 }
  0xaf   :  { %v152_v31 = vadd.f32 0.4994258, %v151_v30  ;;  %v141_v36 = vadd.f32 0.18741608, %v140_v35 }
  0xb1   :  { %v153_v33 = vmul.f32 %v152_v31, %v133_v17  ;;  %v142_v38 = vmul.f32 %v141_v36, %v133_v17  ;;  %v264_v17 = vperm.slane %v528_v8, 2 }
  0xb3   :  { %v154_v34 = vadd.f32 1.0, %v153_v33  ;;  %v143_v42 = vadd.f32 1.1283791, %v142_v38 }
  0xb5   :  { %349 = vrcp.f32 %v154_v34  ;;  %v166_v41 = vand.u32 2147483648, %v154_v34  ;;  %v164_v44 = vand.u32 2147483647, %v154_v34  ;;  %vm160_vm2 = vweird.f32 %v154_v34 }
  0xb6   :  { %v144_v47 = vmul.f32 %v143_v42, %v131_v15  ;;  %351 = vrcp.f32 %v489_v61 }
  0xb7   :  { %v167_v46 = vor.u32 1.1754944e-38, %v166_v41  ;;  %vm165_vm4 = vcmp.eq.f32.partialorder %v164_v44, 8.507059e+37 }
  0xbb   :  { %v350_v37 = vpop.eup %349 }
  0xbc   :  { %v156_v39 = vmul.f32 %v350_v37, %v154_v34  ;;  %vm161_vm1 = vweird.f32 %v350_v37  ;;  %v352_v62 = vpop.eup %351 }
  0xbd   :  { %vm162_vm3 = vmor %vm160_vm2, %vm161_vm1  ;;  %v241_v63 = vmul.f32 128.0, %v352_v62  ;;  %vm245_vm5 = vweird.f32 %v352_v62 }
  0xbe   :  { %v157_v40 = vsub.f32 1.0, %v156_v39 }
  0xbf   :  { %v242_v0 = vsub.f32 1.0, %v241_v63 }
  0xc0   :  { %v158_v43 = vmul.f32 %v350_v37, %v157_v40 }
  0xc1   :  { %v243_v1 = vmul.f32 %v352_v62, %v242_v0 }
  0xc2   :  { %v159_v45 = vadd.f32 %v350_v37, %v158_v43 }
  0xc3   :  { %v244_v2 = vadd.f32 %v352_v62, %v243_v1 }
  0xc4   :  { %v163_v48 = vsel %vm162_vm3, %v350_v37, %v159_v45 }
  0xc5   :  { %v168_v49 = vsel %vm165_vm4, %v167_v46, %v163_v48  ;;  %v246_v3 = vsel %vm245_vm5, %v352_v62, %v244_v2 }
  0xc6   :  { %v169_v50 = vmul.f32 %v168_v49, %v144_v47 }
  0xc8   :  { %v298_v51 = vclamps-f32 %v169_v50, 1.0 }
  0xca   :  { %v172_v53 = vadd.f32 1.0, %v298_v51 }
  0xcc   :  { %v173_v54 = vmul.f32 %v172_v53, %v130_v52 }
  0xce   :  { %v174_v55 = vpack.c.bf16 %v173_v54, %v173_v54 }
  0xd0   :  { %232 = vmatmul.bf16.vlgmr.msra.gmra.mxu1 %v174_v55 }
 0x14d   :  { %v233_v57 = vpop.f32.mrf.mxu1 }
 0x14e   :  { %v234_v58 = vadd.f32 %v233_v57, %v175_v56 }
 0x150   :  { %v237_v59 = vadd.f32 %v234_v58, %v127_v13 }
 0x152   :  { %238 = vadd.xlane.f32.xlu0 %v237_v59 }
 0x155   :  { %v235_v60 = vpop.f32.mrf.mxu1 }
 0x1c5   :  { %v239_v4 = vpop.xlane.xlu0 %238 }
 0x1c6   :  { %v247_v5 = vmul.f32 %v246_v3, %v239_v4 }
 0x1c8   :  { %v248_v6 = vsub.f32 %v237_v59, %v247_v5 }
 0x1ca   :  { %v249_v7 = vmul.f32 %v248_v6, %v248_v6 }
 0x1cc   :  { %250 = vadd.xlane.f32.xlu0 %v249_v7 }
 0x23f   :  { %v251_v9 = vpop.xlane.xlu0 %250 }
 0x240   :  { %v252_v10 = vmul.f32 %v251_v9, %v246_v3 }
 0x242   :  { %v253_v11 = vadd.f32 1e-05, %v252_v10 }
 0x244   :  { %353 = vrsqrt.f32 %v253_v11  ;;  %vm260_vm7 = vweird.f32 %v253_v11 }
 0x24a   :  { %v354_v12 = vpop.eup %353 }
 0x24b   :  { %v255_v13 = vmul.f32 %v354_v12, %v253_v11  ;;  %vm261_vm6 = vweird.f32 %v354_v12 }
 0x24c   :  { %vm262_vm8 = vmor %vm260_vm7, %vm261_vm6 }
 0x24d   :  { %v256_v14 = vmul.f32 %v354_v12, %v255_v13 }
 0x24f   :  { %v257_v15 = vmul.f32 0.5, %v256_v14 }
 0x251   :  { %v258_v16 = vsub.f32 1.5, %v257_v15 }
 0x253   :  { %v259_v18 = vmul.f32 %v354_v12, %v258_v16 }
 0x255   :  { %v263_v19 = vsel %vm262_vm8, %v354_v12, %v259_v18 }
 0x256   :  { %v265_v20 = vmul.f32 %v264_v17, %v263_v19 }
 0x258   :  { %v266_v22 = vmul.f32 %v265_v20, %v248_v6 }
 0x25a   :  { %v268_v23 = vadd.f32 %v267_v21, %v266_v22 }
 0x25c   :  { %269 = vst [vmem:[#allocation10] sm:$0xff] %v268_v23 }
 0x25d   :  { %280 = dma.vmem_to_hbm [thread:$0]  %s276_s3, 128, %s278_s11, [#allocation4]  }
 0x25e   :  { %481 = dma.done.wait [#allocation4], 128  }
 0x25f   :  { %482 = vsyncadd [#allocation4], 4294967168 }
 0x260   :  { %285 = vsyncpa [#allocation3], 1 }
 0x261   :  { %286 = vsyncpa [#allocation6], 1 }
 0x262   :  { %287 = vsyncpa [#allocation9], 1 }
 0x263   :  { %288 = vsyncpa [#allocation4], 1 }

</bundles_post_ra>
